<compile_context>
chip_gen: v7x
topology: tpu7x:2x2x1
jax: 0.10.0
libtpu: 0.0.40
codegen_flags: <defaults>
</compile_context>

<pallas_src>
import numpy as np
import jax
import jax.numpy as jnp
from jax.experimental import pallas as pl
from jax.experimental.pallas import tpu as pltpu

POOL_SIZES = (1, 2, 3, 6)
BN_EPS = 1e-5
P_PAD = 64  # fused branch dim 50 padded to 64


# ----------------------------------------------------------------------------
# Pallas kernel (one (batch, row-tile) grid step; fully weight-stationary)
# ----------------------------------------------------------------------------
def _ppmhead_kernel(x_ref, m_ref, br_ref, wfx_ref, shift_ref, o_ref):
    """
    x_ref     (1, TM, Cin)  f32   input rows (cast to bf16 in-kernel)
    m_ref     (TM, Pp)      bf16  fused bilinear-upsample matrix rows
    br_ref    (1, Pp, C4)   bf16  fused pooled-branch operand (BN scale folded)
    wfx_ref   (Cin, C4)     bf16  identity-branch final-conv weight (scale folded),
                                  grid-invariant -> resident in VMEM
    shift_ref (1, C4)       f32   fused BN shift (all biases folded in)
    o_ref     (1, TM, C4)         output tile
    """
    y = (jnp.dot(m_ref[...], br_ref[0], preferred_element_type=jnp.float32)
         + jnp.dot(x_ref[0].astype(jnp.bfloat16), wfx_ref[...],
                   preferred_element_type=jnp.float32)
         + shift_ref[...])
    o_ref[0] = jnp.maximum(y, 0.0).astype(o_ref.dtype)


# ----------------------------------------------------------------------------
# Glue: adaptive max pool, bilinear upsample matrices, parameter init
# ----------------------------------------------------------------------------
def adaptive_max_pool_nhwc(x, ps):
    """PyTorch-style AdaptiveMaxPool2d on NHWC input. Returns (N, ps, ps, C)."""
    _, H, W, _ = x.shape
    rows = []
    for i in range(ps):
        h0 = (i * H) // ps
        h1 = -(-((i + 1) * H) // ps)
        cols = []
        for j in range(ps):
            w0 = (j * W) // ps
            w1 = -(-((j + 1) * W) // ps)
            cols.append(jnp.max(x[:, h0:h1, w0:w1, :], axis=(1, 2)))  # (N, C)
        rows.append(jnp.stack(cols, axis=1))                          # (N, ps, C)
    return jnp.stack(rows, axis=1)                                    # (N, ps, ps, C)


def interp_matrix_1d(out_size, in_size):
    """Bilinear align_corners=True interpolation matrix (out_size, in_size)."""
    M = np.zeros((out_size, in_size), np.float32)
    if in_size == 1:
        M[:, 0] = 1.0
        return M
    for h in range(out_size):
        src = 0.0 if out_size == 1 else h * (in_size - 1) / (out_size - 1)
        i0 = min(int(np.floor(src)), in_size - 1)
        i1 = min(i0 + 1, in_size - 1)
        w1 = src - i0
        M[h, i0] += 1.0 - w1
        M[h, i1] += w1
    return M


def init_params(key, cin, cout):
    c4 = 4 * cout
    ctot = cin + len(POOL_SIZES) * cout
    ks = jax.random.split(key, 16)
    return {
        "ppm_w": [0.1 * jax.random.normal(ks[i], (cin, cout), jnp.float32)
                  for i in range(4)],
        "ppm_b": [0.1 * jax.random.normal(ks[4 + i], (1, cout), jnp.float32)
                  for i in range(4)],
        "final_w": 0.05 * jax.random.normal(ks[8], (ctot, c4), jnp.float32),
        "final_b": 0.1 * jax.random.normal(ks[9], (1, c4), jnp.float32),
        "bn_gamma": 1.0 + 0.1 * jax.random.normal(ks[10], (1, c4), jnp.float32),
        "bn_beta": 0.1 * jax.random.normal(ks[11], (1, c4), jnp.float32),
        "bn_mean": 0.1 * jax.random.normal(ks[12], (1, c4), jnp.float32),
        "bn_var": 0.5 + 0.5 * jnp.abs(jax.random.normal(ks[13], (1, c4),
                                                        jnp.float32)),
    }


def _pick_row_tile(hw, n_batch, target=512):
    """Largest divisor of hw <= target, preferring 256/128/8-multiples.

    When N == 1, rebalances so the row-tile grid axis has extent >= 2
    (feeds both TensorCores on v7x).
    """
    def best(limit, mult):
        t = (min(limit, hw) // mult) * mult
        while t >= mult:
            if hw % t == 0:
                return t
            t -= mult
        return None

    tm = None
    for mult in (256, 128, 8):
        tm = best(target, mult)
        if tm is not None:
            break
    if tm is None:
        # TODO(synk): odd HW with no 8-multiple divisor falls back to tm=hw;
        # at very large feature maps this can blow the VMEM budget.
        tm = hw
    if (n_batch == 1 and hw // tm < 2 and tm % 16 == 0
            and hw % (tm // 2) == 0):
        tm //= 2
    return tm


def _vmem_limit_bytes(tm, cin, c4, out_bytes):
    """Explicit scoped-VMEM limit from the tile footprint (double-buffered)."""
    need = (tm * cin * 4 * 2          # x tile (f32)
            + tm * P_PAD * 2 * 2      # m tile (bf16)
            + P_PAD * c4 * 2 * 2      # branch operand (bf16)
            + cin * c4 * 2 * 2        # resident wfx (bf16)
            + c4 * 4 * 2              # shift
            + tm * c4 * out_bytes * 2)  # output tile
    return int(min(max(2 * need, 32 << 20), 48 << 20))


# ----------------------------------------------------------------------------
# Forward (Pallas) — NHWC is the real entry point
# ----------------------------------------------------------------------------
def ppmhead_forward_nhwc(x_nhwc, params, out_dtype=jnp.float32):
    N, H, W, Cin = x_nhwc.shape
    Cout = params["ppm_w"][0].shape[1]
    C4 = 4 * Cout
    HW = H * W
    P = sum(ps * ps for ps in POOL_SIZES)           # 1 + 4 + 9 + 36 = 50

    wf = params["final_w"]                          # (4*Cout + Cin, C4)
    wf_x = wf[4 * Cout:4 * Cout + Cin, :]           # identity-branch slice

    # Inference BatchNorm: scale folded into the weights, biases into shift.
    scale = params["bn_gamma"] / jnp.sqrt(params["bn_var"] + BN_EPS)  # (1, C4)

    # Fold each branch's 1x1 conv into its final-conv segment (plus BN scale);
    # collect all biases (bilinear rows sum to 1 -> bias is uniform over HW).
    w_fold = []
    bias_total = params["final_b"]
    for i in range(len(POOL_SIZES)):
        seg = wf[i * Cout:(i + 1) * Cout, :]        # (Cout, C4)
        w_fold.append((params["ppm_w"][i] @ seg) * scale)   # (Cin, C4)
        bias_total = bias_total + params["ppm_b"][i] @ seg
    wf_x_scaled = wf_x * scale                                # (Cin, C4)
    shift = (params["bn_beta"] - params["bn_mean"] * scale
             + bias_total * scale)                            # (1, C4), f32

    # Fused pooled-branch operand (N, Pp, C4) and fused upsample matrix (HW, Pp),
    # branch dim zero-padded 50 -> 64.
    branches = []
    for i, ps in enumerate(POOL_SIZES):
        pooled = adaptive_max_pool_nhwc(x_nhwc, ps).reshape(N, ps * ps, Cin)
        branches.append(jnp.einsum("npc,cd->npd", pooled, w_fold[i]))
    branch_all = jnp.concatenate(branches, axis=1)                     # (N, 50, C4)
    branch_all = jnp.pad(branch_all, ((0, 0), (0, P_PAD - P), (0, 0)))
    m_all = np.concatenate(
        [np.kron(interp_matrix_1d(H, ps), interp_matrix_1d(W, ps))
         for ps in POOL_SIZES], axis=1)                                # (HW, 50)
    m_all = np.pad(m_all, ((0, 0), (0, P_PAD - P)))                    # (HW, 64)

    # x stays f32 (cast to bf16 inside the kernel); weights cast once here.
    x2d = x_nhwc.reshape(N, HW, Cin)
    m_all = jnp.asarray(m_all, jnp.bfloat16)
    branch_all = branch_all.astype(jnp.bfloat16)
    wf_x_scaled = wf_x_scaled.astype(jnp.bfloat16)

    tm = _pick_row_tile(HW, N)
    assert HW % tm == 0
    grid = (N, HW // tm)
    out_bytes = jnp.dtype(out_dtype).itemsize

    out2d = pl.pallas_call(
        _ppmhead_kernel,
        out_shape=jax.ShapeDtypeStruct((N, HW, C4), out_dtype),
        grid_spec=pltpu.PrefetchScalarGridSpec(
            num_scalar_prefetch=0,
            grid=grid,
            in_specs=[
                pl.BlockSpec((1, tm, Cin), lambda b, m: (b, m, 0)),   # x
                pl.BlockSpec((tm, P_PAD), lambda b, m: (m, 0)),       # M_all
                pl.BlockSpec((1, P_PAD, C4), lambda b, m: (b, 0, 0)),  # branch
                pl.BlockSpec((Cin, C4), lambda b, m: (0, 0)),         # wfx (resident)
                pl.BlockSpec((1, C4), lambda b, m: (0, 0)),           # shift
            ],
            out_specs=pl.BlockSpec((1, tm, C4), lambda b, m: (b, m, 0)),
        ),
        compiler_params=pltpu.CompilerParams(
            dimension_semantics=("parallel", "parallel"),
            vmem_limit_bytes=_vmem_limit_bytes(tm, Cin, C4, out_bytes)),
    )(x2d, m_all, branch_all, wf_x_scaled, shift)

    return out2d.reshape(N, H, W, C4)


def ppmhead_forward(x_nchw, params, out_dtype=jnp.float32):
    """NCHW interface matching the PyTorch module (test-only layout glue)."""
    x_nhwc = jnp.transpose(x_nchw, (0, 2, 3, 1))
    out = ppmhead_forward_nhwc(x_nhwc, params, out_dtype=out_dtype)
    return jnp.transpose(out, (0, 3, 1, 2))                          # NCHW


# ----------------------------------------------------------------------------
# Pure-JAX reference (mirrors the PyTorch forward, BN in eval mode)
# ----------------------------------------------------------------------------
def ppmhead_reference(x_nchw, params):
    N, Cin, H, W = x_nchw.shape
    Cout = params["ppm_w"][0].shape[1]
    C4 = 4 * Cout
    HW = H * W

    x_nhwc = jnp.transpose(x_nchw, (0, 2, 3, 1))
    feats = []
    for idx, ps in enumerate(POOL_SIZES):
        pooled = adaptive_max_pool_nhwc(x_nhwc, ps).reshape(N, ps * ps, Cin)
        conv = jnp.einsum("npc,cd->npd", pooled, params["ppm_w"][idx]) \
            + params["ppm_b"][idx][None]
        M = jnp.asarray(np.kron(interp_matrix_1d(H, ps),
                                interp_matrix_1d(W, ps)), jnp.float32)
        up = jnp.einsum("qp,npd->nqd", M, conv)                      # (N, HW, Cout)
        feats.append(up)
    feats.append(x_nhwc.reshape(N, HW, Cin))
    cat = jnp.concatenate(feats, axis=-1)                            # (N, HW, Ctot)
    y = jnp.einsum("nqc,cd->nqd", cat, params["final_w"]) + params["final_b"][None]
    scale = params["bn_gamma"] / jnp.sqrt(params["bn_var"] + BN_EPS)
    shift = params["bn_beta"] - params["bn_mean"] * scale
    y = jnp.maximum(y * scale[None] + shift[None], 0.0)
    return jnp.transpose(y.reshape(N, H, W, C4), (0, 3, 1, 2))


# ----------------------------------------------------------------------------
if __name__ == "__main__":
    N, Cin, H, W = 2, 32, 16, 16
    Cout = 32                       # C4 = 128 -> lane-dense output stores

    key = jax.random.PRNGKey(0)
    kx, kp = jax.random.split(key)
    x = jax.random.normal(kx, (N, Cin, H, W), jnp.float32)
    params = init_params(kp, Cin, Cout)

    out = jax.block_until_ready(ppmhead_forward(x, params))
    ref = jax.block_until_ready(ppmhead_reference(x, params))

    assert out.shape == (N, 4 * Cout, H, W), out.shape
    # bf16 MXU operands (f32 accumulation) -> slightly looser tolerance.
    np.testing.assert_allclose(np.asarray(out), np.asarray(ref),
                               rtol=5e-2, atol=5e-2)

    print("KERNEL_OK")
</pallas_src>

<mosaic_0001>
module attributes {stable_mosaic.version = 11 : i64} {
  func.func @_ppmhead_kernel(%arg0: i32, %arg1: i32, %arg2: memref<1x256x32xf32, #tpu.memory_space<vmem>>, %arg3: memref<256x64xbf16, #tpu.memory_space<vmem>>, %arg4: memref<1x64x128xbf16, #tpu.memory_space<vmem>>, %arg5: memref<32x128xbf16, #tpu.memory_space<vmem>>, %arg6: memref<1x128xf32, #tpu.memory_space<vmem>>, %arg7: memref<1x256x128xf32, #tpu.memory_space<vmem>>) attributes {dimension_semantics = [#tpu.dimension_semantics<parallel>, #tpu.dimension_semantics<parallel>], iteration_bounds = array<i64: 2, 1>, scalar_prefetch = 0 : i64, scratch_operands = 0 : i64, tpu.core_type = #tpu.core_type<tc>, window_params = [{transform_indices = @transform_0, window_bounds = array<i64: 1, 256, 32>}, {transform_indices = @transform_1, window_bounds = array<i64: 256, 64>}, {transform_indices = @transform_2, window_bounds = array<i64: 1, 64, 128>}, {pipeline_mode = #tpu.pipeline_mode<synchronous>, transform_indices = @transform_3, window_bounds = array<i64: 32, 128>}, {pipeline_mode = #tpu.pipeline_mode<synchronous>, transform_indices = @transform_4, window_bounds = array<i64: 1, 128>}, {transform_indices = @transform_5, window_bounds = array<i64: 1, 256, 128>}]} {
    %c0 = arith.constant 0 : index
    %c0_0 = arith.constant 0 : index
    %0 = vector.load %arg3[%c0, %c0_0] : memref<256x64xbf16, #tpu.memory_space<vmem>>, vector<256x64xbf16>
    %c0_1 = arith.constant 0 : index
    %c0_2 = arith.constant 0 : index
    %c0_3 = arith.constant 0 : index
    %1 = vector.load %arg4[%c0_1, %c0_2, %c0_3] : memref<1x64x128xbf16, #tpu.memory_space<vmem>>, vector<1x64x128xbf16>
    %2 = vector.shape_cast %1 : vector<1x64x128xbf16> to vector<64x128xbf16>
    %cst = arith.constant dense<0.000000e+00> : vector<256x128xf32>
    %3 = tpu.matmul %0, %2, %cst {dimension_numbers = #tpu.dot_dimension_numbers<[1], [0], [0], [1], [0, 0, 1, 1], [], []>} : vector<256x64xbf16>, vector<64x128xbf16>, vector<256x128xf32> -> vector<256x128xf32>
    %c0_4 = arith.constant 0 : index
    %c0_5 = arith.constant 0 : index
    %c0_6 = arith.constant 0 : index
    %4 = vector.load %arg2[%c0_4, %c0_5, %c0_6] : memref<1x256x32xf32, #tpu.memory_space<vmem>>, vector<1x256x32xf32>
    %5 = vector.shape_cast %4 : vector<1x256x32xf32> to vector<256x32xf32>
    %6 = arith.truncf %5 : vector<256x32xf32> to vector<256x32xbf16>
    %c0_7 = arith.constant 0 : index
    %c0_8 = arith.constant 0 : index
    %7 = vector.load %arg5[%c0_7, %c0_8] : memref<32x128xbf16, #tpu.memory_space<vmem>>, vector<32x128xbf16>
    %cst_9 = arith.constant dense<0.000000e+00> : vector<256x128xf32>
    %8 = tpu.matmul %6, %7, %cst_9 {dimension_numbers = #tpu.dot_dimension_numbers<[1], [0], [0], [1], [0, 0, 1, 1], [], []>} : vector<256x32xbf16>, vector<32x128xbf16>, vector<256x128xf32> -> vector<256x128xf32>
    %9 = arith.addf %3, %8 : vector<256x128xf32>
    %c0_10 = arith.constant 0 : index
    %c0_11 = arith.constant 0 : index
    %10 = vector.load %arg6[%c0_10, %c0_11] : memref<1x128xf32, #tpu.memory_space<vmem>>, vector<1x128xf32>
    %11 = vector.broadcast %10 : vector<1x128xf32> to vector<256x128xf32>
    %12 = arith.addf %9, %11 : vector<256x128xf32>
    %cst_12 = arith.constant 0.000000e+00 : f32
    %13 = vector.broadcast %cst_12 : f32 to vector<256x128xf32>
    %14 = arith.maximumf %12, %13 : vector<256x128xf32>
    %c0_13 = arith.constant 0 : index
    %c0_14 = arith.constant 0 : index
    %c0_15 = arith.constant 0 : index
    %15 = vector.load %arg7[%c0_13, %c0_14, %c0_15] : memref<1x256x128xf32, #tpu.memory_space<vmem>>, vector<1x256x128xf32>
    %16 = vector.shape_cast %15 : vector<1x256x128xf32> to vector<256x128xf32>
    %17 = vector.shape_cast %14 : vector<256x128xf32> to vector<1x256x128xf32>
    tpu.vector_store %arg7[%c0_13, %c0_14, %c0_15], %17 {strides = array<i32>} : memref<1x256x128xf32, #tpu.memory_space<vmem>>, vector<1x256x128xf32>,
    return
  }
  func.func @transform_0(%arg0: i32, %arg1: i32) -> (i32, i32, i32) {
    %c0_i32 = arith.constant 0 : i32
    %c0_i32_0 = arith.constant 0 : i32
    return %arg0, %arg1, %c0_i32 : i32, i32, i32
  }
  func.func @transform_1(%arg0: i32, %arg1: i32) -> (i32, i32) {
    %c0_i32 = arith.constant 0 : i32
    %c0_i32_0 = arith.constant 0 : i32
    return %arg1, %c0_i32 : i32, i32
  }
  func.func @transform_2(%arg0: i32, %arg1: i32) -> (i32, i32, i32) {
    %c0_i32 = arith.constant 0 : i32
    %c0_i32_0 = arith.constant 0 : i32
    %c0_i32_1 = arith.constant 0 : i32
    return %arg0, %c0_i32, %c0_i32_0 : i32, i32, i32
  }
  func.func @transform_3(%arg0: i32, %arg1: i32) -> (i32, i32) {
    %c0_i32 = arith.constant 0 : i32
    %c0_i32_0 = arith.constant 0 : i32
    %c0_i32_1 = arith.constant 0 : i32
    return %c0_i32, %c0_i32_0 : i32, i32
  }
  func.func @transform_4(%arg0: i32, %arg1: i32) -> (i32, i32) {
    %c0_i32 = arith.constant 0 : i32
    %c0_i32_0 = arith.constant 0 : i32
    %c0_i32_1 = arith.constant 0 : i32
    return %c0_i32, %c0_i32_0 : i32, i32
  }
  func.func @transform_5(%arg0: i32, %arg1: i32) -> (i32, i32, i32) {
    %c0_i32 = arith.constant 0 : i32
    %c0_i32_0 = arith.constant 0 : i32
    return %arg0, %arg1, %c0_i32 : i32, i32, i32
  }
}

</mosaic_0001>

<bundles_post_ra>
// kernel: tpu_custom_call.1
= control target key start
LH: loop header
LB: loop body
LE: loop exit
PB: predicated region body
PF: predicated region fallthrough
CT: control target
= control target key end

     0   :  { %10 = vsyncpa [#allocation3], 0  ;;  %s1876_s0 = inlined_call_operand.vmem [shape: f32[2,256,32], index: 0, kind: input, shape index: {}]   ;;  %s1877_s1 = inlined_call_operand.vmem [shape: bf16[256,64], index: 1, kind: input, shape index: {}]   ;;  %s1878_s2 = inlined_call_operand.vmem [shape: bf16[2,64,128], index: 2, kind: input, shape index: {}]   ;;  %s1879_s3 = inlined_call_operand.vmem [shape: bf16[32,128], index: 3, kind: input, shape index: {}]   ;;  %s1880_s4 = inlined_call_operand.vmem [shape: f32[1,128], index: 4, kind: input, shape index: {}]   ;;  %s1881_s5 = inlined_call_operand.hbm [shape: f32[2,256,128], index: 5, kind: output, shape index: {}]  }
   0x1   :  { %12 = vsyncpa [#allocation3 + $0x1], 0  ;;  %s1562_s18 = smov 0   ;;  %s1564_s19 = smov 0  }
   0x2   :  { %s1566_s20 = smov 0   ;;  %s1568_s21 = smov 0  }
   0x3   :  { %s1570_s22 = smov 0   ;;  %s1572_s23 = smov 0  }
   0x4 LB: > { %s1150_s24 = sadd.s32 4294967295, %s1527_s23   ;;  %s1151_s25 = sadd.s32 4294967294, %s1527_s23   ;;  %s1527_s23 = sphi %s1572_s23, %s18_s23   ;;  %s1523_s22 = sphi %s1570_s22, %s1888_s22   ;;  %s1519_s21 = sphi %s1568_s21, %s1887_s21   ;;  %s1515_s20 = sphi %s1566_s20, %s1886_s20   ;;  %s1511_s19 = sphi %s1564_s19, %s1885_s19   ;;  %s1507_s18 = sphi %s1562_s18, %s1884_s18  }
   0x5   : > { %s30_s26 = sadd.s32 1, %s1523_s22  ;;  %s161_s27 = sadd.s32 1, %s1515_s20 }
   0x6   : > { %p32_p0 = scmp.ge.s32.totalorder %s30_s26, 2  ;;  %p171_p1 = scmp.ne.s32.totalorder %s1515_s20, %s1511_s19 }
   0x7   : > { %p172_p2 = scmp.eq.s32.totalorder %s1150_s24, 1  ;;  %p177_p3 = scmp.ne.s32.totalorder %s1511_s19, %s1507_s18 }
   0x8   : > { %s1890_s26 = smov (%p32_p0, %s30_s26), 0  ;;  %p178_p5 = scmp.eq.s32.totalorder %s1151_s25, 1 }
   0x9   : > { %p1602_p4 = por %p172_p2, %p171_p1  ;;  %s156_s29 = ssub.s32 %s1523_s22, %s1890_s26 }
   0xa   : > { %p1155_p6 = scmp.ge.s32.totalorder %s1527_s23, 1  ;;  %p159_p7 = scmp.eq.s32.totalorder %s156_s29, 0 }
   0xb   : > { %p1609_p8 = por %p178_p5, %p177_p3  ;;  %p232_p9 = scmp.lt.s32.totalorder %s1527_s23, 3 }
   0xc   : > { %s1615_s6 = scalar_select %p159_p7, %s1515_s20, %s161_s27  }
   0xd   : > { %p233_p10 = pnand %p1155_p6, %p232_p9 }
   0xe   : > { %p275_p11 = scmp.lt.s32.totalorder (!%p233_p10), %s1519_s21, 1  ;;  %v1429_v0 = vld [vmem:[%s1879_s3] sm:$0xff] (!%p233_p10)   ;;  %v1431_v1 = vld [vmem:[%s1879_s3 + $0x8] sm:$0xff] (!%p233_p10)   ;;  %vm715_vm0 = vcmask (!%p233_p10), 523264   ;;  %vm401_vm1 = vcmask (!%p233_p10), 261120   ;;  %v1435_v23 = vld [vmem:[%s1877_s1 + $0x10] sm:$0xff] (!%p233_p10)  }
   0xf   : > { %236 = sbr.rel (%p233_p10) target bundleno = 335 (0x14f), region = 40  ;;  %1262 = vmatprep.subr.bf16.mxu1 (!%p233_p10), %v1429_v0  ;;  %v1433_v2 = vld [vmem:[%s1877_s1] sm:$0xff] (!%p233_p10)   ;;  %v1434_v22 = vld [vmem:[%s1877_s1 + $0x8] sm:$0xff] (!%p233_p10)   ;;  %v1436_v30 = vld [vmem:[%s1877_s1 + $0x18] sm:$0xff] (!%p233_p10)   ;;  %s271_s8 = sand.u32 (!%p233_p10), 1, %s1511_s19  }
  0x10   : > { %1263 = vmatpush3.bf16.msra.mxu1 (!%p233_p10), %v1429_v0  ;;  %1306 = vmatprep.mubr.msk.bf16.mxu0 (!%p233_p10), %vm715_vm0, %v1433_v2  ;;  %v1437_v31 = vld [vmem:[%s1877_s1 + $0x20] sm:$0xff] (!%p233_p10)   ;;  %v1438_v38 = vld [vmem:[%s1877_s1 + $0x28] sm:$0xff] (!%p233_p10)   ;;  %v1439_v39 = vld [vmem:[%s1877_s1 + $0x30] sm:$0xff] (!%p233_p10)   ;;  %s1223_s13 = sshll.u32 (!%p233_p10), %s1519_s21, 12  ;;  %s1529_s25 = smov (!%p233_p10), [#allocation2]  }
  0x11   : > { %1264 = vmatprep.subr.bf16.mxu1 (!%p233_p10), %v1431_v1  ;;  %v1440_v46 = vld [vmem:[%s1877_s1 + $0x38] sm:$0xff] (!%p233_p10)   ;;  %v1441_v47 = vld [vmem:[%s1877_s1 + $0x40] sm:$0xff] (!%p233_p10)   ;;  %v1442_v54 = vld [vmem:[%s1877_s1 + $0x48] sm:$0xff] (!%p233_p10)   ;;  %s1821_s17 = scalar_lea.hbm (!%p233_p10), %s1881_s5, %s1223_s13  ;;  %s1453_s27 = sshll.u32 (!%p233_p10), %s1529_s25, 4  ;;  %s1454_s27 = int_to_ptr.vmem [resolvable:$false] %s1453_s27 }
  0x12   : > { %v1443_v55 = vld [vmem:[%s1877_s1 + $0x50] sm:$0xff] (!%p233_p10)   ;;  %v1444_v62 = vld [vmem:[%s1877_s1 + $0x58] sm:$0xff] (!%p233_p10)   ;;  %v1445_v63 = vld [vmem:[%s1877_s1 + $0x60] sm:$0xff] (!%p233_p10)  }
  0x14   : > { %1265 = vmatpush3.bf16.msra.mxu1 (!%p233_p10), %v1431_v1 }
  0x16   : > { %s276_s11 = scalar_select %p275_p11, %s1519_s21, 1 }
  0x17   : > { %s1830_s21 = scalar_lea.sflag [#allocation3], %s271_s8 }
  0x18   : > { %s1221_s14 = sshll.u32 %s276_s11, 8  ;;  %s1222_s15 = sshll.u32 %s276_s11, 5 }
  0x19   : > { %s294_s24 = scalar_lea.vmem %s1878_s2, %s1222_s15  ;;  %s1635_s29 = scalar_lea.vmem %s1876_s0, %s1221_s14 }
  0x1a   : > { %v1427_v3 = vld [vmem:[%s294_s24] sm:$0xff]   ;;  %v1428_v4 = vld [vmem:[%s294_s24 + $0x8] sm:$0xff]   ;;  %v1430_v7 = vld [vmem:[%s294_s24 + $0x10] sm:$0xff]   ;;  %s1156_s11 = sshll.u32 %s271_s8, 8 }
  0x1b   : > { %1298 = vmatprep.subr.bf16.mxu0 %v1427_v3  ;;  %v337_v5 = vld [vmem:[%s1635_s29] sm:$0xff]  ;;  %v338_v6 = vld [vmem:[%s1635_s29 + $0x8] sm:$0xff]  ;;  %v339_v9 = vld [vmem:[%s1635_s29 + $0x10] sm:$0xff]  ;;  %s1757_s12 = scalar_lea.vmem [#allocation2], %s1156_s11 }
  0x1c   : > { %1299 = vmatpush3.bf16.msra.mxu0 %v1427_v3  ;;  %v369_v8 = vpack.c.bf16 %v338_v6, %v337_v5  ;;  %v340_v10 = vld [vmem:[%s1635_s29 + $0x18] sm:$0xff]  ;;  %v341_v11 = vld [vmem:[%s1635_s29 + $0x20] sm:$0xff]  ;;  %v342_v12 = vld [vmem:[%s1635_s29 + $0x28] sm:$0xff]  ;;  %s1044_s14 = sshll.u32 %s1757_s12, 4  ;;  %s1823_s14 = int_to_ptr.vmem [resolvable:$true] %s1044_s14 }
  0x1d   : > { %1300 = vmatprep.subr.bf16.mxu0 %v1428_v4  ;;  %v370_v13 = vpack.c.bf16 %v340_v10, %v339_v9  ;;  %v371_v14 = vpack.c.bf16 %v342_v12, %v341_v11  ;;  %v1432_v15 = vld [vmem:[%s294_s24 + $0x18] sm:$0xff]   ;;  %v343_v16 = vld [vmem:[%s1635_s29 + $0x30] sm:$0xff]  ;;  %v345_v18 = vld [vmem:[%s1635_s29 + $0x40] sm:$0xff]  ;;  %s1449_s24 = scalar_lea.vmem %s1823_s14, 4096  ;;  %p1456_p1 = scmp.lt.s32.totalorder %s1823_s14, %s1454_s27 }
  0x1e   : > { %1266 = vmatprep.mubr.msk.bf16.mxu1 %vm401_vm1, %v369_v8  ;;  %v344_v17 = vld [vmem:[%s1635_s29 + $0x38] sm:$0xff]  ;;  %v346_v19 = vld [vmem:[%s1635_s29 + $0x48] sm:$0xff]  ;;  %v347_v24 = vld [vmem:[%s1635_s29 + $0x50] sm:$0xff]  ;;  %p1450_p12 = scmp.ne.s32.totalorder %s1823_s14, %s1449_s24 }
  0x1f   : > { %1267 = vmatmul.mubr.msk.bf16.vlgmr.msra.gmra.mrb[0].mxu1 %vm401_vm1, %v370_v13  ;;  %v372_v20 = vpack.c.bf16 %v344_v17, %v343_v16  ;;  %v373_v21 = vpack.c.bf16 %v346_v19, %v345_v18  ;;  %v348_v25 = vld [vmem:[%s1635_s29 + $0x58] sm:$0xff]  ;;  %v349_v26 = vld [vmem:[%s1635_s29 + $0x60] sm:$0xff]  ;;  %v350_v27 = vld [vmem:[%s1635_s29 + $0x68] sm:$0xff] }
  0x20   : > { %1301 = vmatpush3.bf16.msra.mxu0 %v1428_v4  ;;  %1270 = vmatprep.mubr.msk.bf16.mxu1 %vm401_vm1, %v371_v14  ;;  %v374_v28 = vpack.c.bf16 %v348_v25, %v347_v24  ;;  %v375_v29 = vpack.c.bf16 %v350_v27, %v349_v26  ;;  %v351_v32 = vld [vmem:[%s1635_s29 + $0x70] sm:$0xff]  ;;  %v352_v33 = vld [vmem:[%s1635_s29 + $0x78] sm:$0xff]  ;;  %v353_v34 = vld [vmem:[%s1635_s29 + $0x80] sm:$0xff]  ;;  %p1451_p13 = pnand %p1450_p12, %p1602_p4 }
  0x21   : > { %1302 = vmatprep.subr.bf16.mxu0 %v1430_v7  ;;  %v354_v35 = vld [vmem:[%s1635_s29 + $0x88] sm:$0xff]  ;;  %v376_v36 = vpack.c.bf16 %v352_v33, %v351_v32  ;;  %v355_v40 = vld [vmem:[%s1635_s29 + $0x90] sm:$0xff]  ;;  %v356_v41 = vld [vmem:[%s1635_s29 + $0x98] sm:$0xff] }
  0x22   : > { %v377_v37 = vpack.c.bf16 %v354_v35, %v353_v34  ;;  %v357_v42 = vld [vmem:[%s1635_s29 + $0xa0] sm:$0xff]  ;;  %v358_v43 = vld [vmem:[%s1635_s29 + $0xa8] sm:$0xff]  ;;  %v378_v44 = vpack.c.bf16 %v356_v41, %v355_v40  ;;  %v359_v48 = vld [vmem:[%s1635_s29 + $0xb0] sm:$0xff]  ;;  %p1452_p0 = pneg %p1451_p13 }
  0x23   : > { %v379_v45 = vpack.c.bf16 %v358_v43, %v357_v42  ;;  %v360_v49 = vld [vmem:[%s1635_s29 + $0xb8] sm:$0xff]  ;;  %v361_v50 = vld [vmem:[%s1635_s29 + $0xc0] sm:$0xff]  ;;  %v362_v51 = vld [vmem:[%s1635_s29 + $0xc8] sm:$0xff] }
  0x24   : > { %1303 = vmatpush3.bf16.msra.mxu0 %v1430_v7  ;;  %v380_v52 = vpack.c.bf16 %v360_v49, %v359_v48  ;;  %v381_v53 = vpack.c.bf16 %v362_v51, %v361_v50  ;;  %v363_v56 = vld [vmem:[%s1635_s29 + $0xd0] sm:$0xff]  ;;  %v364_v57 = vld [vmem:[%s1635_s29 + $0xd8] sm:$0xff]  ;;  %v365_v58 = vld [vmem:[%s1635_s29 + $0xe0] sm:$0xff] }
  0x25   : > { %1304 = vmatprep.subr.bf16.mxu0 %v1432_v15  ;;  %v366_v59 = vld [vmem:[%s1635_s29 + $0xe8] sm:$0xff]  ;;  %v382_v60 = vpack.c.bf16 %v364_v57, %v363_v56  ;;  %v367_v0 = vld [vmem:[%s1635_s29 + $0xf0] sm:$0xff]  ;;  %v368_v1 = vld [vmem:[%s1635_s29 + $0xf8] sm:$0xff]  ;;  %s1455_s29 = scalar_lea.vmem %s1454_s27, 8192 }
  0x26   : > { %v383_v61 = vpack.c.bf16 %v366_v59, %v365_v58  ;;  %v384_v2 = vpack.c.bf16 %v368_v1, %v367_v0  ;;  %v1446_v3 = vld [vmem:[%s1877_s1 + $0x68] sm:$0xff]   ;;  %v1447_v4 = vld [vmem:[%s1877_s1 + $0x70] sm:$0xff]   ;;  %v1448_v5 = vld [vmem:[%s1877_s1 + $0x78] sm:$0xff]   ;;  %p1457_p2 = scmp.lt.s32.totalorder %s1455_s29, %s1449_s24 }
  0x27   : > { %1271 = vmatmul.mubr.msk.bf16.gmra.mrb[4].mxu1 %vm401_vm1, %v372_v20  ;;  %v1749_v13 = vld [vmem:[%s1880_s4] ss:$0 sm:$0xff] }
  0x28   : > { %1305 = vmatpush3.bf16.msra.mxu0 %v1432_v15  ;;  %1274 = vmatprep.mubr.msk.bf16.mxu1 %vm401_vm1, %v373_v21  ;;  %p1458_p3 = por %p1457_p2, %p1456_p1 }
  0x2a   : > { %p1459_p5 = pnand %p1458_p3, %p1452_p0 }
  0x2b   : > { %1307 = vmatmul.mubr.msk.bf16.vlgmr.msra.gmra.mrb[0].mxu0 %vm715_vm0, %v1434_v22 }
  0x2c   : > { %1310 = vmatprep.mubr.msk.bf16.mxu0 %vm715_vm0, %v1435_v23 }
  0x2f   : > { %1275 = vmatmul.mubr.msk.bf16.gmra.mrb[8].mxu1 %vm401_vm1, %v374_v28 }
  0x30   : > { %1278 = vmatprep.mubr.msk.bf16.mxu1 %vm401_vm1, %v375_v29 }
  0x33   : > { %1311 = vmatmul.mubr.msk.bf16.gmra.mrb[4].mxu0 %vm715_vm0, %v1436_v30 }
  0x34   : > { %1314 = vmatprep.mubr.msk.bf16.mxu0 %vm715_vm0, %v1437_v31 }
  0x37   : > { %1279 = vmatmul.mubr.msk.bf16.gmra.mrb[12].mxu1 %vm401_vm1, %v376_v36 }
  0x38   : > { %1282 = vmatprep.mubr.msk.bf16.mxu1 %vm401_vm1, %v377_v37 }
  0x3b   : > { %1315 = vmatmul.mubr.msk.bf16.gmra.mrb[8].mxu0 %vm715_vm0, %v1438_v38 }
  0x3c   : > { %1318 = vmatprep.mubr.msk.bf16.mxu0 %vm715_vm0, %v1439_v39 }
  0x3f   : > { %1283 = vmatmul.mubr.msk.bf16.gmra.mrb[16].mxu1 %vm401_vm1, %v378_v44 }
  0x40   : > { %1286 = vmatprep.mubr.msk.bf16.mxu1 %vm401_vm1, %v379_v45 }
  0x43   : > { %1319 = vmatmul.mubr.msk.bf16.gmra.mrb[12].mxu0 %vm715_vm0, %v1440_v46 }
  0x44   : > { %1322 = vmatprep.mubr.msk.bf16.mxu0 %vm715_vm0, %v1441_v47 }
  0x47   : > { %1287 = vmatmul.mubr.msk.bf16.gmra.mrb[20].mxu1 %vm401_vm1, %v380_v52 }
  0x48   : > { %1290 = vmatprep.mubr.msk.bf16.mxu1 %vm401_vm1, %v381_v53 }
  0x4b   : > { %1323 = vmatmul.mubr.msk.bf16.gmra.mrb[16].mxu0 %vm715_vm0, %v1442_v54 }
  0x4c   : > { %1326 = vmatprep.mubr.msk.bf16.mxu0 %vm715_vm0, %v1443_v55 }
  0x4f   : > { %1291 = vmatmul.mubr.msk.bf16.gmra.mrb[24].mxu1 %vm401_vm1, %v382_v60 }
  0x50   : > { %1294 = vmatprep.mubr.msk.bf16.mxu1 %vm401_vm1, %v383_v61 }
  0x53   : > { %1327 = vmatmul.mubr.msk.bf16.gmra.mrb[20].mxu0 %vm715_vm0, %v1444_v62 }
  0x54   : > { %1330 = vmatprep.mubr.msk.bf16.mxu0 %vm715_vm0, %v1445_v63 }
  0x57   : > { %1295 = vmatmul.mubr.msk.bf16.gmra.mrb[28].mxu1 %vm401_vm1, %v384_v2 }
  0x5b   : > { %1331 = vmatmul.mubr.msk.bf16.gmra.mrb[24].mxu0 %vm715_vm0, %v1446_v3 }
  0x5c   : > { %1334 = vmatprep.mubr.msk.bf16.mxu0 %vm715_vm0, %v1447_v4 }
  0x63   : > { %1335 = vmatmul.mubr.msk.bf16.gmra.mrb[28].mxu0 %vm715_vm0, %v1448_v5 }
  0xf2   : > { %v1268_v6 = vpop.f32.mrb[0].mxu1 }
  0xf3   : > { %v484_v7 = vpop.f32.mrb[1].mxu1 }
  0xf4   : > { %v1269_v8 = vpop.f32.mrb[2].mxu1 }
  0xf5   : > { %v487_v9 = vpop.f32.mrb[3].mxu1 }
  0xfa   : > { %v1272_v10 = vpop.f32.mrb[4].mxu1 }
  0xfb   : > { %v500_v11 = vpop.f32.mrb[5].mxu1 }
  0xfc   : > { %v1273_v14 = vpop.f32.mrb[6].mxu1 }
  0xfd   : > { %v503_v17 = vpop.f32.mrb[7].mxu1 }
  0xfe   : > { %v1308_v12 = vpop.f32.mrb[0].mxu0 }
  0xff   : > { %v807_v15 = vadd.f32 %v1308_v12, %v1268_v6  ;;  %v798_v16 = vpop.f32.mrb[1].mxu0 }
 0x100   : > { %v799_v18 = vadd.f32 %v798_v16, %v484_v7  ;;  %v1309_v19 = vpop.f32.mrb[2].mxu0 }
 0x101   : > { %v934_v20 = vadd.f32 %v1749_v13, %v807_v15  ;;  %v810_v21 = vadd.f32 %v1309_v19, %v1269_v8  ;;  %v801_v22 = vpop.f32.mrb[3].mxu0 }
 0x102   : > { %v932_v23 = vadd.f32 %v1749_v13, %v799_v18  ;;  %v802_v24 = vadd.f32 %v801_v22, %v487_v9  ;;  %v1276_v29 = vpop.f32.mrb[8].mxu1 }
 0x103   : > { %v966_v25 = vmax.f32 %v934_v20, 0.0  ;;  %v935_v26 = vadd.f32 %v1749_v13, %v810_v21  ;;  %v516_v31 = vpop.f32.mrb[9].mxu1 }
 0x104   : > { %v964_v27 = vmax.f32 %v932_v23, 0.0  ;;  %v933_v28 = vadd.f32 %v1749_v13, %v802_v24  ;;  %v1277_v34 = vpop.f32.mrb[10].mxu1 }
 0x105   : > { %998 = vst [vmem:[%s1757_s12 + $0x10] sm:$0xff] %v966_v25  ;;  %v967_v30 = vmax.f32 %v935_v26, 0.0  ;;  %v519_v37 = vpop.f32.mrb[11].mxu1 }
 0x106   : > { %996 = vst [vmem:[%s1757_s12] sm:$0xff] %v964_v27  ;;  %v965_v32 = vmax.f32 %v933_v28, 0.0  ;;  %v1312_v33 = vpop.f32.mrb[4].mxu0 }
 0x107   : > { %999 = vst [vmem:[%s1757_s12 + $0x18] sm:$0xff] %v967_v30  ;;  %v823_v35 = vadd.f32 %v1312_v33, %v1272_v10  ;;  %v814_v36 = vpop.f32.mrb[5].mxu0 }
 0x108   : > { %997 = vst [vmem:[%s1757_s12 + $0x8] sm:$0xff] %v965_v32  ;;  %v815_v38 = vadd.f32 %v814_v36, %v500_v11  ;;  %v1313_v39 = vpop.f32.mrb[6].mxu0 }
 0x109   : > { %v938_v40 = vadd.f32 %v1749_v13, %v823_v35  ;;  %v826_v41 = vadd.f32 %v1313_v39, %v1273_v14  ;;  %v817_v42 = vpop.f32.mrb[7].mxu0 }
 0x10a   : > { %v936_v43 = vadd.f32 %v1749_v13, %v815_v38  ;;  %v818_v44 = vadd.f32 %v817_v42, %v503_v17  ;;  %v1280_v49 = vpop.f32.mrb[12].mxu1 }
 0x10b   : > { %v970_v45 = vmax.f32 %v938_v40, 0.0  ;;  %v939_v46 = vadd.f32 %v1749_v13, %v826_v41  ;;  %v532_v51 = vpop.f32.mrb[13].mxu1 }
 0x10c   : > { %v968_v47 = vmax.f32 %v936_v43, 0.0  ;;  %v937_v48 = vadd.f32 %v1749_v13, %v818_v44  ;;  %v1281_v54 = vpop.f32.mrb[14].mxu1 }
 0x10d   : > { %1002 = vst [vmem:[%s1757_s12 + $0x30] sm:$0xff] %v970_v45  ;;  %v971_v50 = vmax.f32 %v939_v46, 0.0  ;;  %v535_v57 = vpop.f32.mrb[15].mxu1 }
 0x10e   : > { %1000 = vst [vmem:[%s1757_s12 + $0x20] sm:$0xff] %v968_v47  ;;  %v969_v52 = vmax.f32 %v937_v48, 0.0  ;;  %v1316_v53 = vpop.f32.mrb[8].mxu0 }
 0x10f   : > { %1003 = vst [vmem:[%s1757_s12 + $0x38] sm:$0xff] %v971_v50  ;;  %v839_v55 = vadd.f32 %v1316_v53, %v1276_v29  ;;  %v830_v56 = vpop.f32.mrb[9].mxu0 }
 0x110   : > { %1001 = vst [vmem:[%s1757_s12 + $0x28] sm:$0xff] %v969_v52  ;;  %v831_v58 = vadd.f32 %v830_v56, %v516_v31  ;;  %v1317_v59 = vpop.f32.mrb[10].mxu0 }
 0x111   : > { %v942_v60 = vadd.f32 %v1749_v13, %v839_v55  ;;  %v842_v61 = vadd.f32 %v1317_v59, %v1277_v34  ;;  %v833_v62 = vpop.f32.mrb[11].mxu0 }
 0x112   : > { %v940_v63 = vadd.f32 %v1749_v13, %v831_v58  ;;  %v834_v0 = vadd.f32 %v833_v62, %v519_v37  ;;  %v1284_v5 = vpop.f32.mrb[16].mxu1 }
 0x113   : > { %v974_v1 = vmax.f32 %v942_v60, 0.0  ;;  %v943_v2 = vadd.f32 %v1749_v13, %v842_v61  ;;  %v548_v7 = vpop.f32.mrb[17].mxu1 }
 0x114   : > { %v972_v3 = vmax.f32 %v940_v63, 0.0  ;;  %v941_v4 = vadd.f32 %v1749_v13, %v834_v0  ;;  %v1285_v10 = vpop.f32.mrb[18].mxu1 }
 0x115   : > { %1006 = vst [vmem:[%s1757_s12 + $0x50] sm:$0xff] %v974_v1  ;;  %v975_v6 = vmax.f32 %v943_v2, 0.0  ;;  %v551_v14 = vpop.f32.mrb[19].mxu1 }
 0x116   : > { %1004 = vst [vmem:[%s1757_s12 + $0x40] sm:$0xff] %v972_v3  ;;  %v973_v8 = vmax.f32 %v941_v4, 0.0  ;;  %v1320_v9 = vpop.f32.mrb[12].mxu0 }
 0x117   : > { %1007 = vst [vmem:[%s1757_s12 + $0x58] sm:$0xff] %v975_v6  ;;  %v855_v11 = vadd.f32 %v1320_v9, %v1280_v49  ;;  %v846_v12 = vpop.f32.mrb[13].mxu0 }
 0x118   : > { %1005 = vst [vmem:[%s1757_s12 + $0x48] sm:$0xff] %v973_v8  ;;  %v847_v15 = vadd.f32 %v846_v12, %v532_v51  ;;  %v1321_v16 = vpop.f32.mrb[14].mxu0 }
 0x119   : > { %v946_v17 = vadd.f32 %v1749_v13, %v855_v11  ;;  %v858_v18 = vadd.f32 %v1321_v16, %v1281_v54  ;;  %v849_v19 = vpop.f32.mrb[15].mxu0 }
 0x11a   : > { %v944_v20 = vadd.f32 %v1749_v13, %v847_v15  ;;  %v850_v21 = vadd.f32 %v849_v19, %v535_v57  ;;  %v1288_v26 = vpop.f32.mrb[20].mxu1 }
 0x11b   : > { %v978_v22 = vmax.f32 %v946_v17, 0.0  ;;  %v947_v23 = vadd.f32 %v1749_v13, %v858_v18  ;;  %v564_v28 = vpop.f32.mrb[21].mxu1 }
 0x11c   : > { %v976_v24 = vmax.f32 %v944_v20, 0.0  ;;  %v945_v25 = vadd.f32 %v1749_v13, %v850_v21  ;;  %v1289_v31 = vpop.f32.mrb[22].mxu1 }
 0x11d   : > { %1010 = vst [vmem:[%s1757_s12 + $0x70] sm:$0xff] %v978_v22  ;;  %v979_v27 = vmax.f32 %v947_v23, 0.0  ;;  %v567_v34 = vpop.f32.mrb[23].mxu1 }
 0x11e   : > { %1008 = vst [vmem:[%s1757_s12 + $0x60] sm:$0xff] %v976_v24  ;;  %v977_v29 = vmax.f32 %v945_v25, 0.0  ;;  %v1324_v30 = vpop.f32.mrb[16].mxu0 }
 0x11f   : > { %1011 = vst [vmem:[%s1757_s12 + $0x78] sm:$0xff] %v979_v27  ;;  %v871_v32 = vadd.f32 %v1324_v30, %v1284_v5  ;;  %v862_v33 = vpop.f32.mrb[17].mxu0 }
 0x120   : > { %1009 = vst [vmem:[%s1757_s12 + $0x68] sm:$0xff] %v977_v29  ;;  %v863_v35 = vadd.f32 %v862_v33, %v548_v7  ;;  %v1325_v36 = vpop.f32.mrb[18].mxu0 }
 0x121   : > { %v950_v37 = vadd.f32 %v1749_v13, %v871_v32  ;;  %v874_v38 = vadd.f32 %v1325_v36, %v1285_v10  ;;  %v865_v39 = vpop.f32.mrb[19].mxu0 }
 0x122   : > { %v948_v40 = vadd.f32 %v1749_v13, %v863_v35  ;;  %v866_v41 = vadd.f32 %v865_v39, %v551_v14  ;;  %v1292_v46 = vpop.f32.mrb[24].mxu1 }
 0x123   : > { %v982_v42 = vmax.f32 %v950_v37, 0.0  ;;  %v951_v43 = vadd.f32 %v1749_v13, %v874_v38  ;;  %v580_v48 = vpop.f32.mrb[25].mxu1 }
 0x124   : > { %v980_v44 = vmax.f32 %v948_v40, 0.0  ;;  %v949_v45 = vadd.f32 %v1749_v13, %v866_v41  ;;  %v1293_v51 = vpop.f32.mrb[26].mxu1 }
 0x125   : > { %1014 = vst [vmem:[%s1757_s12 + $0x90] sm:$0xff] %v982_v42  ;;  %v983_v47 = vmax.f32 %v951_v43, 0.0  ;;  %v583_v54 = vpop.f32.mrb[27].mxu1 }
 0x126   : > { %1012 = vst [vmem:[%s1757_s12 + $0x80] sm:$0xff] %v980_v44  ;;  %v981_v49 = vmax.f32 %v949_v45, 0.0  ;;  %v1328_v50 = vpop.f32.mrb[20].mxu0 }
 0x127   : > { %1015 = vst [vmem:[%s1757_s12 + $0x98] sm:$0xff] %v983_v47  ;;  %v887_v52 = vadd.f32 %v1328_v50, %v1288_v26  ;;  %v878_v53 = vpop.f32.mrb[21].mxu0 }
 0x128   : > { %1013 = vst [vmem:[%s1757_s12 + $0x88] sm:$0xff] %v981_v49  ;;  %v879_v55 = vadd.f32 %v878_v53, %v564_v28  ;;  %v1329_v56 = vpop.f32.mrb[22].mxu0 }
 0x129   : > { %v954_v57 = vadd.f32 %v1749_v13, %v887_v52  ;;  %v890_v58 = vadd.f32 %v1329_v56, %v1289_v31  ;;  %v881_v59 = vpop.f32.mrb[23].mxu0 }
 0x12a   : > { %v952_v60 = vadd.f32 %v1749_v13, %v879_v55  ;;  %v882_v61 = vadd.f32 %v881_v59, %v567_v34  ;;  %v1296_v2 = vpop.f32.mrb[28].mxu1 }
 0x12b   : > { %v986_v62 = vmax.f32 %v954_v57, 0.0  ;;  %v955_v63 = vadd.f32 %v1749_v13, %v890_v58  ;;  %v596_v4 = vpop.f32.mrb[29].mxu1 }
 0x12c   : > { %v984_v0 = vmax.f32 %v952_v60, 0.0  ;;  %v953_v1 = vadd.f32 %v1749_v13, %v882_v61  ;;  %v1297_v7 = vpop.f32.mrb[30].mxu1 }
 0x12d   : > { %1018 = vst [vmem:[%s1757_s12 + $0xb0] sm:$0xff] %v986_v62  ;;  %v987_v3 = vmax.f32 %v955_v63, 0.0  ;;  %v599_v10 = vpop.f32.mrb[31].mxu1 }
 0x12e   : > { %1016 = vst [vmem:[%s1757_s12 + $0xa0] sm:$0xff] %v984_v0  ;;  %v985_v5 = vmax.f32 %v953_v1, 0.0  ;;  %v1332_v6 = vpop.f32.mrb[24].mxu0 }
 0x12f   : > { %1019 = vst [vmem:[%s1757_s12 + $0xb8] sm:$0xff] %v987_v3  ;;  %v903_v8 = vadd.f32 %v1332_v6, %v1292_v46  ;;  %v894_v9 = vpop.f32.mrb[25].mxu0 }
 0x130   : > { %1017 = vst [vmem:[%s1757_s12 + $0xa8] sm:$0xff] %v985_v5  ;;  %v895_v11 = vadd.f32 %v894_v9, %v580_v48  ;;  %v1333_v12 = vpop.f32.mrb[26].mxu0 }
 0x131   : > { %v958_v14 = vadd.f32 %v1749_v13, %v903_v8  ;;  %v906_v15 = vadd.f32 %v1333_v12, %v1293_v51  ;;  %v897_v16 = vpop.f32.mrb[27].mxu0 }
 0x132   : > { %v956_v17 = vadd.f32 %v1749_v13, %v895_v11  ;;  %v898_v18 = vadd.f32 %v897_v16, %v583_v54 }
 0x133   : > { %v990_v19 = vmax.f32 %v958_v14, 0.0  ;;  %v959_v20 = vadd.f32 %v1749_v13, %v906_v15 }
 0x134   : > { %v988_v21 = vmax.f32 %v956_v17, 0.0  ;;  %v957_v22 = vadd.f32 %v1749_v13, %v898_v18 }
 0x135   : > { %1022 = vst [vmem:[%s1757_s12 + $0xd0] sm:$0xff] %v990_v19  ;;  %v991_v23 = vmax.f32 %v959_v20, 0.0 }
 0x136   : > { %1020 = vst [vmem:[%s1757_s12 + $0xc0] sm:$0xff] %v988_v21  ;;  %v989_v24 = vmax.f32 %v957_v22, 0.0  ;;  %v1336_v25 = vpop.f32.mrb[28].mxu0 }
 0x137   : > { %1023 = vst [vmem:[%s1757_s12 + $0xd8] sm:$0xff] %v991_v23  ;;  %v919_v26 = vadd.f32 %v1336_v25, %v1296_v2  ;;  %v910_v27 = vpop.f32.mrb[29].mxu0 }
 0x138   : > { %1021 = vst [vmem:[%s1757_s12 + $0xc8] sm:$0xff] %v989_v24  ;;  %v911_v28 = vadd.f32 %v910_v27, %v596_v4  ;;  %v1337_v29 = vpop.f32.mrb[30].mxu0 }
 0x139   : > { %v962_v30 = vadd.f32 %v1749_v13, %v919_v26  ;;  %v922_v31 = vadd.f32 %v1337_v29, %v1297_v7  ;;  %v913_v32 = vpop.f32.mrb[31].mxu0 }
 0x13a   : > { %v960_v33 = vadd.f32 %v1749_v13, %v911_v28  ;;  %v914_v34 = vadd.f32 %v913_v32, %v599_v10 }
 0x13b   : > { %v994_v35 = vmax.f32 %v962_v30, 0.0  ;;  %v963_v36 = vadd.f32 %v1749_v13, %v922_v31 }
 0x13c   : > { %v992_v37 = vmax.f32 %v960_v33, 0.0  ;;  %v961_v38 = vadd.f32 %v1749_v13, %v914_v34 }
 0x13d   : > { %1026 = vst [vmem:[%s1757_s12 + $0xf0] sm:$0xff] %v994_v35  ;;  %v995_v39 = vmax.f32 %v963_v36, 0.0 }
 0x13e   : > { %1024 = vst [vmem:[%s1757_s12 + $0xe0] sm:$0xff] %v992_v37  ;;  %v993_v40 = vmax.f32 %v961_v38, 0.0 }
 0x13f   : > { %1027 = vst [vmem:[%s1757_s12 + $0xf8] sm:$0xff] %v995_v39 }
 0x140   : > { %1025 = vst [vmem:[%s1757_s12 + $0xe8] sm:$0xff] %v993_v40 }
 0x141   : > { %1462 = shalt.err (!%p1459_p5)
}
 0x142   : > { %s1463_s7 = scalar_lea.hbm %s1821_s17, 4096  ;;  %s1467_s10 = scalar_lea.hbm %s1881_s5, 8192 }
 0x143   : > { %p1464_p6 = scmp.ne.s32.totalorder %s1821_s17, %s1463_s7  ;;  %p1468_p10 = scmp.lt.u32.totalorder %s1821_s17, %s1881_s5 }
 0x144   : > { %p1469_p11 = scmp.lt.u32.totalorder %s1467_s10, %s1463_s7  ;;  %p1471_p13 = scmp.lt.u32.totalorder %s1463_s7, %s1821_s17 }
 0x145   : > { %p1465_p7 = pnand %p1464_p6, %p1602_p4 }
 0x146   : > { %p1470_p12 = por %p1469_p11, %p1468_p10 }
 0x147   : > { %p1466_p9 = pneg %p1465_p7 }
 0x148   : > { %p1472_p0 = por %p1471_p13, %p1470_p12 }
 0x14a   : > { %p1473_p1 = pnand %p1472_p0, %p1466_p9 }
 0x14c   : > { %1476 = shalt.err (!%p1473_p1)
}
 0x14d   : > { %s1530_s13 = smov 128   ;;  %s1531_s15 = smov 8  }
 0x14e   : > { %1370 = dma.vmem_to_hbm [thread:$0]  (%p1602_p4), %s1823_s14, 4096, %s1821_s17, %s1830_s21, %s1530_s13, %s1530_s13, %s1531_s15  }
 0x14f PF: > { %p1376_p2 = scmp.ge.s32.totalorder %s1527_s23, 2  ;;  %s1059_s16 = sand.u32 1, %s1507_s18  }
 0x150   : > { %s1060_s24 = scalar_lea.sflag [#allocation3], %s1059_s16 }
 0x151   : > { %p1373_p3 = pnand %p1376_p2, %p1609_p8 }
 0x153   : > { %1502 = dma.done.wait (!%p1373_p3), %s1060_s24, 4096  }
 0x154   : > { %1504 = vsyncadd (!%p1373_p3), %s1060_s24, 4294963200  ;;  %s18_s23 = sadd.s32 1, %s1527_s23   ;;  %s1884_s18 = smov %s1511_s19 }
 0x155   : > { %p15_p5 = scmp.ge.s32.totalorder %s18_s23, 4   ;;  %s1885_s19 = smov %s1515_s20 }
 0x156   : > { %s1886_s20 = smov %s1615_s6  ;;  %s1887_s21 = smov %s1523_s22 }
 0x157   : > { %s1888_s22 = smov %s1890_s26  ;;  %17 = sbr.rel (!%p15_p5) target bundleno = 4 (0x4), region = 81 }
 0x15e   :  { %1065 = vsyncpa [#allocation3], 1 }
 0x15f   :  { %1067 = vsyncpa [#allocation3 + $0x1], 1 }

</bundles_post_ra>
